<compile_context>
chip_gen: v7x
topology: tpu7x:2x2x1
jax: 0.10.0
libtpu: 0.0.40
codegen_flags: <defaults>
</compile_context>

<pallas_src>
import math

import jax
import jax.numpy as jnp
from jax.experimental import pallas as pl
from jax.experimental.pallas import tpu as pltpu

NUM_LAYERS = 2
T_CHUNK_MAX = 16


def _ceil_to(x, m):
    return ((x + m - 1) // m) * m


def _pick_chunk(L, max_chunk=T_CHUNK_MAX):
    """Largest divisor of L that is <= max_chunk (timesteps per grid step)."""
    for c in range(min(L, max_chunk), 0, -1):
        if L % c == 0:
            return c
    return 1


# --------------------------------------------------------------------------- #
# Tiled GEMM (loop-invariant projections, hoisted out of the recurrent kernels)
# --------------------------------------------------------------------------- #
def _matmul_bias_kernel(x_ref, w_ref, b_ref, o_ref):
    o_ref[...] = (jnp.dot(x_ref[...], w_ref[...],
                          preferred_element_type=jnp.float32) + b_ref[...])


def matmul_bias(x, w_t, b, tm_max=256, tn_max=512):
    """y = x @ w_t + b as a grid-tiled MXU GEMM (K kept whole; K <= 3H here)."""
    M, K = x.shape
    Nout = w_t.shape[1]
    if M <= tm_max:
        tm, Mp = M, M
    else:
        tm, Mp = tm_max, _ceil_to(M, tm_max)
    if Nout <= tn_max:
        tn, Np_ = Nout, Nout
    else:
        tn, Np_ = tn_max, _ceil_to(Nout, tn_max)
    x_p = x if Mp == M else jnp.pad(x, ((0, Mp - M), (0, 0)))
    w_p = w_t if Np_ == Nout else jnp.pad(w_t, ((0, 0), (0, Np_ - Nout)))
    b_p = b if Np_ == Nout else jnp.pad(b, ((0, 0), (0, Np_ - Nout)))
    out = pl.pallas_call(
        _matmul_bias_kernel,
        out_shape=jax.ShapeDtypeStruct((Mp, Np_), jnp.float32),
        grid_spec=pltpu.PrefetchScalarGridSpec(
            num_scalar_prefetch=0,
            grid=(Mp // tm, Np_ // tn),
            in_specs=[pl.BlockSpec((tm, K), lambda i, j: (i, 0)),
                      pl.BlockSpec((K, tn), lambda i, j: (0, j)),
                      pl.BlockSpec((1, tn), lambda i, j: (0, j))],
            out_specs=pl.BlockSpec((tm, tn), lambda i, j: (i, j))),
        compiler_params=pltpu.CompilerParams(
            dimension_semantics=("parallel", "parallel")),
    )(x_p, w_p, b_p)
    if Mp != M or Np_ != Nout:
        out = out[:M, :Nout]
    return out


# --------------------------------------------------------------------------- #
# LSTM helpers
# --------------------------------------------------------------------------- #
def _lstm_gates(gates, c):
    """PyTorch gate order (i, f, g, o). `gates` already contains x@Wih + b (+ h@Whh)."""
    H = c.shape[-1]
    i = jax.nn.sigmoid(gates[:, 0 * H:1 * H])
    f = jax.nn.sigmoid(gates[:, 1 * H:2 * H])
    g = jnp.tanh(gates[:, 2 * H:3 * H])
    o = jax.nn.sigmoid(gates[:, 3 * H:4 * H])
    c_new = f * c + i * g
    h_new = o * jnp.tanh(c_new)
    return h_new, c_new


# --------------------------------------------------------------------------- #
# Encoder: one bidirectional LSTM layer, grid over time chunks
# --------------------------------------------------------------------------- #
def _bilstm_layer_kernel(xg_f_ref, xg_b_ref, whh_f_ref, whh_b_ref,
                         out_f_ref, out_b_ref, hf, cf, hb, cb):
    """Both directions, T_CHUNK timesteps per grid step.  xg_* hold x@Wih + (b_ih+b_hh)
    in SOURCE order; the backward direction's blocks arrive via a reversed index_map
    and are traversed back-to-front inside the chunk (flip-free)."""
    c_idx = pl.program_id(0)
    Tc = out_f_ref.shape[0]

    @pl.when(c_idx == 0)
    def _():
        for r in (hf, cf, hb, cb):
            r[...] = jnp.zeros(r.shape, r.dtype)

    whh_f = whh_f_ref[...]
    whh_b = whh_b_ref[...]
    h_f, c_f = hf[...], cf[...]
    h_b, c_b = hb[...], cb[...]

    for k in range(Tc):                              # unrolled inner time loop
        # forward: source position c*Tc + k
        g = xg_f_ref[k] + jnp.dot(h_f, whh_f, preferred_element_type=jnp.float32)
        h_f, c_f = _lstm_gates(g, c_f)
        out_f_ref[k] = h_f
        # backward: scan step c*Tc + k  == source position Ls-1-(c*Tc+k); this grid
        # step's block is block nC-1-c, so the in-block index is Tc-1-k.
        g = xg_b_ref[Tc - 1 - k] + jnp.dot(h_b, whh_b, preferred_element_type=jnp.float32)
        h_b, c_b = _lstm_gates(g, c_b)
        out_b_ref[Tc - 1 - k] = h_b

    hf[...], cf[...] = h_f, c_f
    hb[...], cb[...] = h_b, c_b


def bilstm_layer(xg_f, xg_b, whh_f, whh_b):
    Ls, N, G = xg_f.shape
    H = G // 4
    Tc = _pick_chunk(Ls)
    nC = Ls // Tc
    fwd_map = lambda c: (c, 0, 0)
    bwd_map = lambda c: (nC - 1 - c, 0, 0)
    fn = pl.pallas_call(
        _bilstm_layer_kernel,
        out_shape=(jax.ShapeDtypeStruct((Ls, N, H), jnp.float32),
                   jax.ShapeDtypeStruct((Ls, N, H), jnp.float32)),
        grid_spec=pltpu.PrefetchScalarGridSpec(
            num_scalar_prefetch=0,
            grid=(nC,),
            in_specs=[pl.BlockSpec((Tc, N, G), fwd_map),        # xg fwd chunk
                      pl.BlockSpec((Tc, N, G), bwd_map),        # xg bwd chunk (reversed)
                      pl.BlockSpec((H, G), lambda c: (0, 0)),   # Whh fwd (resident)
                      pl.BlockSpec((H, G), lambda c: (0, 0))],  # Whh bwd (resident)
            out_specs=(pl.BlockSpec((Tc, N, H), fwd_map),
                       pl.BlockSpec((Tc, N, H), bwd_map)),      # bwd lands in source order
            scratch_shapes=[pltpu.VMEM((N, H), jnp.float32) for _ in range(4)]),
        compiler_params=pltpu.CompilerParams(
            dimension_semantics=("arbitrary",)),
    )
    return fn(xg_f, xg_b, whh_f, whh_b)


# --------------------------------------------------------------------------- #
# Decoder: 2 LSTM cells + attention + output-MLP hidden, grid over time chunks
# --------------------------------------------------------------------------- #
def _decoder_fused_kernel(xg0_ref, h0i_ref, h1i_ref,
                          whh0_ref, wih1_ref, whh1_ref, b1_ref,
                          enc_ref, proj_ref,
                          w1a_ref, w1b_ref, b1m_ref,
                          hid_ref, h0s, c0s, h1s, c1s):
    c_idx = pl.program_id(0)
    Tc = hid_ref.shape[0]

    @pl.when(c_idx == 0)
    def _():
        h0s[...] = h0i_ref[...]
        h1s[...] = h1i_ref[...]
        c0s[...] = jnp.zeros(c0s.shape, c0s.dtype)
        c1s[...] = jnp.zeros(c1s.shape, c1s.dtype)

    # Hoist all resident operand loads out of the unrolled time loop.
    whh0 = whh0_ref[...]
    wih1 = wih1_ref[...]
    whh1 = whh1_ref[...]
    b1 = b1_ref[...]
    enc = enc_ref[...]          # (N, Ls, 2H)
    proj = proj_ref[...]        # (N, Ls, H)
    w1a = w1a_ref[...]
    w1b = w1b_ref[...]
    b1m = b1m_ref[...]

    h0, c0 = h0s[...], c0s[...]
    h1, c1 = h1s[...], c1s[...]

    for k in range(Tc):                              # unrolled inner time loop
        # decoder LSTM layer 0 (input contribution precomputed outside the kernel)
        g0 = xg0_ref[k] + jnp.dot(h0, whh0, preferred_element_type=jnp.float32)
        h0, c0 = _lstm_gates(g0, c0)
        # decoder LSTM layer 1
        g1 = (jnp.dot(h0, wih1, preferred_element_type=jnp.float32)
              + jnp.dot(h1, whh1, preferred_element_type=jnp.float32) + b1)
        h1, c1 = _lstm_gates(g1, c1)
        # attention (q=1): multiply+reduce on VPU/XLU instead of M=1-sublane matmuls
        s = jnp.sum(h1[:, None, :] * proj, axis=-1, keepdims=True)     # (N, Ls, 1)
        s = s - jnp.max(s, axis=1, keepdims=True)
        e = jnp.exp(s)
        score = e * pl.reciprocal(jnp.sum(e, axis=1, keepdims=True), approx=True)
        ctx = jnp.sum(score * enc, axis=1)                              # (N, 2H)
        # output MLP hidden: tanh([dec_out, ctx] @ W1 + b1) (concat split into 2 dots)
        hid_ref[k] = jnp.tanh(
            jnp.dot(h1, w1a, preferred_element_type=jnp.float32)
            + jnp.dot(ctx, w1b, preferred_element_type=jnp.float32) + b1m)

    h0s[...], c0s[...] = h0, c0
    h1s[...], c1s[...] = h1, c1


def decoder_fused(xg0, h0_init, h1_init, whh0, wih1, whh1, b1_lstm,
                  enc_out, proj, w1a, w1b, b1m):
    Lt, N, G = xg0.shape
    H = G // 4
    Ls, DH = enc_out.shape[1], enc_out.shape[2]
    Tc = _pick_chunk(Lt)
    nC = Lt // Tc
    const2 = lambda c: (0, 0)
    const3 = lambda c: (0, 0, 0)
    fn = pl.pallas_call(
        _decoder_fused_kernel,
        out_shape=jax.ShapeDtypeStruct((Lt, N, H), jnp.float32),
        grid_spec=pltpu.PrefetchScalarGridSpec(
            num_scalar_prefetch=0,
            grid=(nC,),
            in_specs=[
                pl.BlockSpec((Tc, N, G), lambda c: (c, 0, 0)),  # xg0 chunk
                pl.BlockSpec((N, H), const2),                   # h0 init
                pl.BlockSpec((N, H), const2),                   # h1 init
                pl.BlockSpec((H, G), const2),                   # Whh0 (resident)
                pl.BlockSpec((H, G), const2),                   # Wih1 (resident)
                pl.BlockSpec((H, G), const2),                   # Whh1 (resident)
                pl.BlockSpec((1, G), const2),                   # b1 (fused ih+hh)
                pl.BlockSpec((N, Ls, DH), const3),              # enc_out (resident)
                pl.BlockSpec((N, Ls, H), const3),               # proj (resident)
                pl.BlockSpec((H, H), const2),                   # out W1a
                pl.BlockSpec((DH, H), const2),                  # out W1b
                pl.BlockSpec((1, H), const2),                   # out b1
            ],
            out_specs=pl.BlockSpec((Tc, N, H), lambda c: (c, 0, 0)),
            scratch_shapes=[pltpu.VMEM((N, H), jnp.float32) for _ in range(4)]),
        compiler_params=pltpu.CompilerParams(
            dimension_semantics=("arbitrary",)),
    )
    return fn(xg0, h0_init, h1_init, whh0, wih1, whh1, b1_lstm,
              enc_out, proj, w1a, w1b, b1m)


# --------------------------------------------------------------------------- #
# Model glue (embeddings, layer loop, batch padding)
# --------------------------------------------------------------------------- #
def encoder_forward(params, src):
    """2-layer bidirectional LSTM. Returns (encoder_out (N,Ls,2H), h_l0_fwd, h_l0_bwd)."""
    H = params["hidden"]
    x = params["src_emb"][src]                         # (N, Ls, E)  -- XLA gather
    N, Ls, _ = x.shape
    layer_in = jnp.transpose(x, (1, 0, 2))             # time-major (Ls, N, E)
    h0_fwd_final = h0_bwd_final = None
    for layer in range(NUM_LAYERS):
        (wih_f, whh_f, b_f), (wih_b, whh_b, b_b) = params["enc_lstm"][layer]
        Ein = layer_in.shape[-1]
        flat = layer_in.reshape(Ls * N, Ein)
        # input-to-hidden contribution for ALL timesteps (both directions use the
        # same, un-flipped input; the kernel's index_map handles the reversal)
        xg_f = matmul_bias(flat, wih_f, b_f).reshape(Ls, N, 4 * H)
        xg_b = matmul_bias(flat, wih_b, b_b).reshape(Ls, N, 4 * H)
        out_f, out_b = bilstm_layer(xg_f, xg_b, whh_f, whh_b)  # both in SOURCE order
        if layer == 0:
            # PyTorch h_n order: [l0 fwd, l0 bwd, l1 fwd, l1 bwd]; decoder uses h_n[:2]
            h0_fwd_final = out_f[Ls - 1]       # forward final state
            h0_bwd_final = out_b[0]            # backward final state (source pos 0)
        layer_in = jnp.concatenate([out_f, out_b], axis=-1)   # (Ls, N, 2H)
    enc_out = jnp.transpose(layer_in, (1, 0, 2))       # (N, Ls, 2H)
    return enc_out, h0_fwd_final, h0_bwd_final


def seq2seq_forward(params, source, target, source_mask, tgt_sos_index):
    """source (N,Ls) int32, target (N,Lt) int32 -> logits (N, Lt, V)."""
    del source_mask  # reference Attention.forward ignores src_mask
    H = params["hidden"]
    N0 = source.shape[0]
    Np = _ceil_to(N0, 8)                               # sublane-align the batch
    if Np != N0:
        source = jnp.pad(source, ((0, Np - N0), (0, 0)))
        target = jnp.pad(target, ((0, Np - N0), (0, 0)))

    enc_out, h0_init, h1_init = encoder_forward(params, source)
    N, Ls, DH = enc_out.shape

    # Hoisted, loop-invariant encoder projection for attention: (N, Ls, H)
    proj = matmul_bias(enc_out.reshape(N * Ls, DH),
                       params["attn_wp_t"], params["attn_bp"]).reshape(N, Ls, H)

    # Teacher-forced decoder inputs for every step, embedded & gate-projected once
    Lt = target.shape[1]
    dec_in_ids = jnp.concatenate(
        [jnp.full((N, 1), tgt_sos_index, dtype=target.dtype), target[:, :-1]], axis=1)
    x_t = jnp.transpose(params["tgt_emb"][dec_in_ids], (1, 0, 2))   # (Lt, N, E_tgt)
    (wih0, whh0, b0), (wih1, whh1, b1_lstm) = params["dec_lstm"]
    xg0 = matmul_bias(x_t.reshape(Lt * N, x_t.shape[-1]), wih0, b0).reshape(Lt, N, 4 * H)

    hid = decoder_fused(xg0, h0_init, h1_init,
                        whh0, wih1, whh1, b1_lstm,
                        enc_out, proj,
                        params["out_w1a_t"], params["out_w1b_t"], params["out_b1"])

    # Vocab projection hoisted out of the recurrent kernel into one tiled GEMM
    V = params["out_w2_t"].shape[1]
    logits = matmul_bias(hid.reshape(Lt * N, H),
                         params["out_w2_t"], params["out_b2"])      # (Lt*N, V)
    logits = jnp.transpose(logits.reshape(Lt, N, V), (1, 0, 2))     # (N, Lt, V)
    return logits[:N0]


# --------------------------------------------------------------------------- #
# Deterministic parameter init
# --------------------------------------------------------------------------- #
def _uniform(key, shape, scale):
    return jax.random.uniform(key, shape, jnp.float32, -scale, scale)


def init_params(key, src_vocab, tgt_vocab, e_src, e_tgt, H):
    keys = iter(jax.random.split(key, 128))
    k = 1.0 / math.sqrt(H)
    p = {"hidden": H}
    p["src_emb"] = jax.random.normal(next(keys), (src_vocab, e_src), jnp.float32) * 0.1
    p["tgt_emb"] = jax.random.normal(next(keys), (tgt_vocab, e_tgt), jnp.float32) * 0.1

    enc = []
    for layer in range(NUM_LAYERS):
        in_size = e_src if layer == 0 else 2 * H
        dirs = []
        for _ in range(2):                    # forward, backward
            wih_t = _uniform(next(keys), (in_size, 4 * H), k)
            whh_t = _uniform(next(keys), (H, 4 * H), k)
            # b = b_ih + b_hh (sum of two uniform draws, matching PyTorch init)
            b = _uniform(next(keys), (1, 4 * H), k) + _uniform(next(keys), (1, 4 * H), k)
            dirs.append((wih_t, whh_t, b))
        enc.append(tuple(dirs))
    p["enc_lstm"] = enc

    dec = []
    for layer in range(NUM_LAYERS):
        in_size = e_tgt if layer == 0 else H
        wih_t = _uniform(next(keys), (in_size, 4 * H), k)
        whh_t = _uniform(next(keys), (H, 4 * H), k)
        b = _uniform(next(keys), (1, 4 * H), k) + _uniform(next(keys), (1, 4 * H), k)
        dec.append((wih_t, whh_t, b))
    p["dec_lstm"] = dec

    # Attention: Linear(2H -> H)
    p["attn_wp_t"] = _uniform(next(keys), (2 * H, H), k)
    p["attn_bp"] = _uniform(next(keys), (1, H), k)

    # decoder_linear: Linear(3H -> H), Tanh, Linear(H -> V)
    w1_t = _uniform(next(keys), (3 * H, H), k)
    p["out_w1a_t"] = w1_t[:H]                 # multiplies decoder output (first in concat)
    p["out_w1b_t"] = w1_t[H:]                 # multiplies attention context
    p["out_b1"] = _uniform(next(keys), (1, H), k)
    p["out_w2_t"] = _uniform(next(keys), (H, tgt_vocab), k)
    p["out_b2"] = _uniform(next(keys), (1, tgt_vocab), k)
    return p


# --------------------------------------------------------------------------- #
if __name__ == "__main__":
    key = jax.random.PRNGKey(0)
    N, Ls, Lt = 2, 8, 8
    H, E_SRC, E_TGT = 32, 16, 16
    SRC_VOCAB, TGT_VOCAB = 50, 40
    TGT_SOS = 1

    kp, ks, kt = jax.random.split(key, 3)
    params = init_params(kp, SRC_VOCAB, TGT_VOCAB, E_SRC, E_TGT, H)
    source = jax.random.randint(ks, (N, Ls), 0, SRC_VOCAB, dtype=jnp.int32)
    target = jax.random.randint(kt, (N, Lt), 0, TGT_VOCAB, dtype=jnp.int32)
    source_mask = jnp.ones((N, Ls), jnp.float32)   # present in API, unused by attention

    logits = seq2seq_forward(params, source, target, source_mask, TGT_SOS)
    logits = jax.block_until_ready(logits)

    assert logits.shape == (N, Lt, TGT_VOCAB), logits.shape
    assert logits.dtype == jnp.float32
    assert bool(jnp.all(jnp.isfinite(logits)))
    print("KERNEL_OK")
</pallas_src>

<mosaic_0001>
module attributes {stable_mosaic.version = 11 : i64} {
  func.func @_matmul_bias_kernel(%arg0: i32, %arg1: i32, %arg2: memref<64x16xf32, #tpu.memory_space<vmem>>, %arg3: memref<16x128xf32, #tpu.memory_space<vmem>>, %arg4: memref<1x128xf32, #tpu.memory_space<vmem>>, %arg5: memref<64x128xf32, #tpu.memory_space<vmem>>) attributes {dimension_semantics = [#tpu.dimension_semantics<parallel>, #tpu.dimension_semantics<parallel>], iteration_bounds = array<i64: 1, 1>, scalar_prefetch = 0 : i64, scratch_operands = 0 : i64, tpu.core_type = #tpu.core_type<tc>, window_params = [{transform_indices = @transform_0, window_bounds = array<i64: 64, 16>}, {transform_indices = @transform_1, window_bounds = array<i64: 16, 128>}, {transform_indices = @transform_2, window_bounds = array<i64: 1, 128>}, {transform_indices = @transform_3, window_bounds = array<i64: 64, 128>}]} {
    %c0 = arith.constant 0 : index
    %c0_0 = arith.constant 0 : index
    %0 = vector.load %arg2[%c0, %c0_0] : memref<64x16xf32, #tpu.memory_space<vmem>>, vector<64x16xf32>
    %c0_1 = arith.constant 0 : index
    %c0_2 = arith.constant 0 : index
    %1 = vector.load %arg3[%c0_1, %c0_2] : memref<16x128xf32, #tpu.memory_space<vmem>>, vector<16x128xf32>
    %cst = arith.constant dense<0.000000e+00> : vector<64x128xf32>
    %2 = tpu.matmul %0, %1, %cst {dimension_numbers = #tpu.dot_dimension_numbers<[1], [0], [0], [1], [0, 0, 1, 1], [], []>} : vector<64x16xf32>, vector<16x128xf32>, vector<64x128xf32> -> vector<64x128xf32>
    %c0_3 = arith.constant 0 : index
    %c0_4 = arith.constant 0 : index
    %3 = vector.load %arg4[%c0_3, %c0_4] : memref<1x128xf32, #tpu.memory_space<vmem>>, vector<1x128xf32>
    %4 = vector.broadcast %3 : vector<1x128xf32> to vector<64x128xf32>
    %5 = arith.addf %2, %4 : vector<64x128xf32>
    %c0_5 = arith.constant 0 : index
    %c0_6 = arith.constant 0 : index
    %6 = vector.load %arg5[%c0_5, %c0_6] : memref<64x128xf32, #tpu.memory_space<vmem>>, vector<64x128xf32>
    tpu.vector_store %arg5[%c0_5, %c0_6], %5 {strides = array<i32>} : memref<64x128xf32, #tpu.memory_space<vmem>>, vector<64x128xf32>,
    return
  }
  func.func @transform_0(%arg0: i32, %arg1: i32) -> (i32, i32) {
    %c0_i32 = arith.constant 0 : i32
    %c0_i32_0 = arith.constant 0 : i32
    return %arg0, %c0_i32 : i32, i32
  }
  func.func @transform_1(%arg0: i32, %arg1: i32) -> (i32, i32) {
    %c0_i32 = arith.constant 0 : i32
    %c0_i32_0 = arith.constant 0 : i32
    return %c0_i32, %arg1 : i32, i32
  }
  func.func @transform_2(%arg0: i32, %arg1: i32) -> (i32, i32) {
    %c0_i32 = arith.constant 0 : i32
    %c0_i32_0 = arith.constant 0 : i32
    return %c0_i32, %arg1 : i32, i32
  }
  func.func @transform_3(%arg0: i32, %arg1: i32) -> (i32, i32) {
    %c0_i32 = arith.constant 0 : i32
    return %arg0, %arg1 : i32, i32
  }
}

</mosaic_0001>

<bundles_post_ra>
// kernel: tpu_custom_call.1
= control target key start
LH: loop header
LB: loop body
LE: loop exit
PB: predicated region body
PF: predicated region fallthrough
CT: control target
= control target key end

     0   :  { %vm32_vm0 = vcmask 130048   ;;  %s330_s0 = inlined_call_operand.vmem [shape: f32[64,16], index: 0, kind: input, shape index: {}]   ;;  %s331_s1 = inlined_call_operand.vmem [shape: f32[16,128], index: 1, kind: input, shape index: {}]   ;;  %s332_s2 = inlined_call_operand.vmem [shape: f32[1,128], index: 2, kind: input, shape index: {}]   ;;  %s333_s3 = inlined_call_operand.hbm [shape: f32[64,128], index: 3, kind: output, shape index: {}]  }
   0x1   :  { %v23_v0 = vld [vmem:[%s331_s1] sm:$0xff]  ;;  %v24_v1 = vld [vmem:[%s331_s1 + $0x8] sm:$0xff] }
   0x2   :  { %v15_v2 = vld [vmem:[%s330_s0] sm:$0xff]  ;;  %v221_v3 = vpack.c.bf16 %v24_v1, %v23_v0 }
   0x3   :  { %209 = vmatprep.mubr.msk.f32.mxu0 %vm32_vm0, %v15_v2  ;;  %v19_v4 = vld [vmem:[%s330_s0 + $0x20] sm:$0xff] }
   0x4   :  { %215 = vmatprep.mubr.msk.f32.mxu1 %vm32_vm0, %v19_v4  ;;  %222 = vmatprep.subr.bf16.mxu0 %v221_v3 }
   0x5   :  { %225 = vmatprep.subr.bf16.mxu1 %v221_v3 }
   0x6   :  { %8 = vsyncpa [#allocation3], 0  ;;  %224 = vmatpush3.bf16.msra.mxu0 %v221_v3  ;;  %226 = vmatpush3.bf16.msra.mxu1 %v221_v3  ;;  %v16_v5 = vld [vmem:[%s330_s0 + $0x8] sm:$0xff]  ;;  %v17_v7 = vld [vmem:[%s330_s0 + $0x10] sm:$0xff]  ;;  %s254_s6 = smov [#allocation2]  }
   0x7   :  { %v20_v6 = vld [vmem:[%s330_s0 + $0x28] sm:$0xff]  ;;  %v21_v8 = vld [vmem:[%s330_s0 + $0x30] sm:$0xff]  ;;  %v18_v9 = vld [vmem:[%s330_s0 + $0x18] sm:$0xff]  ;;  %s175_s7 = sshll.u32 %s254_s6, 4  ;;  %s176_s7 = int_to_ptr.vmem [resolvable:$true] %s175_s7 }
   0x8   :  { %v22_v10 = vld [vmem:[%s330_s0 + $0x38] sm:$0xff]  ;;  %v186_v11 = vld [vmem:[%s332_s2] ss:$0 sm:$0xff]  ;;  %s230_s0 = scalar_lea.vmem %s176_s7, 1024  ;;  %p235_p1 = scmp.lt.s32.totalorder %s176_s7, %s176_s7 }
   0x9   :  { %210 = vmatmul.mubr.msk.f32.vlgmr.msra.gmra.mrb[0].mxu0 %vm32_vm0, %v16_v5  ;;  %216 = vmatmul.mubr.msk.f32.vlgmr.msra.gmra.mrb[0].mxu1 %vm32_vm0, %v20_v6  ;;  %p231_p0 = scmp.ne.s32.totalorder %s176_s7, %s230_s0  ;;  %p236_p2 = scmp.lt.s32.totalorder %s230_s0, %s230_s0 }
   0xa   :  { %212 = vmatprep.mubr.msk.f32.mxu0 %vm32_vm0, %v17_v7  ;;  %218 = vmatprep.mubr.msk.f32.mxu1 %vm32_vm0, %v21_v8 }
   0xb   :  { %p237_p3 = por %p236_p2, %p235_p1 }
   0xd   :  { %213 = vmatmul.mubr.msk.f32.gmra.mrb[2].mxu0 %vm32_vm0, %v18_v9  ;;  %219 = vmatmul.mubr.msk.f32.gmra.mrb[2].mxu1 %vm32_vm0, %v22_v10  ;;  %p238_p4 = pnand %p237_p3, %p231_p0 }
  0xdc   :  { %v211_v12 = vpop.f32.mrb[0].mxu0  ;;  %v217_v13 = vpop.f32.mrb[0].mxu1 }
  0xdd   :  { %v129_v14 = vadd.f32 %v211_v12, %v186_v11  ;;  %v149_v15 = vadd.f32 %v217_v13, %v186_v11  ;;  %v123_v16 = vpop.f32.mrb[1].mxu0  ;;  %v143_v17 = vpop.f32.mrb[1].mxu1 }
  0xde   :  { %v124_v18 = vadd.f32 %v186_v11, %v123_v16  ;;  %v144_v19 = vadd.f32 %v186_v11, %v143_v17 }
  0xdf   :  { %163 = vst [vmem:[#allocation2 + $0x8] sm:$0xff] %v129_v14  ;;  %167 = vst [vmem:[#allocation2 + $0x28] sm:$0xff] %v149_v15 }
  0xe0   :  { %162 = vst [vmem:[#allocation2] sm:$0xff] %v124_v18  ;;  %166 = vst [vmem:[#allocation2 + $0x20] sm:$0xff] %v144_v19  ;;  %v214_v20 = vpop.f32.mrb[2].mxu0  ;;  %v220_v21 = vpop.f32.mrb[2].mxu1 }
  0xe1   :  { %v139_v22 = vadd.f32 %v214_v20, %v186_v11  ;;  %v159_v23 = vadd.f32 %v220_v21, %v186_v11  ;;  %v133_v24 = vpop.f32.mrb[3].mxu0  ;;  %v153_v25 = vpop.f32.mrb[3].mxu1 }
  0xe2   :  { %v134_v26 = vadd.f32 %v186_v11, %v133_v24  ;;  %v154_v27 = vadd.f32 %v186_v11, %v153_v25 }
  0xe3   :  { %165 = vst [vmem:[#allocation2 + $0x18] sm:$0xff] %v139_v22  ;;  %169 = vst [vmem:[#allocation2 + $0x38] sm:$0xff] %v159_v23 }
  0xe4   :  { %164 = vst [vmem:[#allocation2 + $0x10] sm:$0xff] %v134_v26  ;;  %168 = vst [vmem:[#allocation2 + $0x30] sm:$0xff] %v154_v27 }
  0xe5   :  { %241 = shalt.err (!%p238_p4)
}
  0xe6   :  { %s242_s9 = scalar_lea.hbm %s333_s3, 1024 }
  0xe7   :  { %p243_p5 = scmp.ne.s32.totalorder %s333_s3, %s242_s9  ;;  %p246_p6 = scmp.lt.u32.totalorder %s242_s9, %s333_s3 }
  0xe9   :  { %p248_p7 = pnand %p246_p6, %p243_p5 }
  0xeb   :  { %251 = shalt.err (!%p248_p7)
}
  0xec   :  { %s255_s14 = smov 128   ;;  %s256_s15 = smov 8  }
  0xed   :  { %181 = dma.vmem_to_hbm [thread:$0]  %s176_s7, 1024, %s333_s3, [#allocation3], %s255_s14, %s255_s14, %s256_s15  }
  0xee   :  { %252 = dma.done.wait [#allocation3], 1024  }
  0xef   :  { %253 = vsyncadd [#allocation3], 4294966272 }
  0xf0   :  { %185 = vsyncpa [#allocation3], 1 }

</bundles_post_ra>
